<compile_context>
chip_gen: v6e
topology: v6e:2x2x1
jax: 0.10.0
libtpu: 0.0.40
codegen_flags: <defaults>
</compile_context>

<pallas_src>
import functools

import jax
import jax.numpy as jnp
from jax import lax
from jax.experimental import pallas as pl
from jax.experimental.pallas import tpu as pltpu


def _fused_meta_conv_kernel(b_ref, w_ref, p_ref, o_ref, *,
                            cout, wo_width, m_valid, n_pad,
                            inv_n_first, inv_n_rest):
    """Whole ConvWithMetaLayer forward on one lane-dense (Cout, Mp) tile.

    b_ref : (Cout, 1)    f32  VMEM - conv bias (column vector)
    w_ref : (2*Cout, K)  bf16 VMEM - [conv weight ; RANDOM_PROJ], flattened OIHW
    p_ref : (K, Mp)      bf16 VMEM - transposed im2col patches, zero-padded to Mp
    o_ref : (Cout, Mp)   f32  VMEM - final conv output (lane-dense)
    """
    # Single MXU push for both convolutions (weights stacked on sublanes).
    ar = jnp.dot(w_ref[...], p_ref[...],
                 preferred_element_type=jnp.float32)          # (2*Cout, Mp) f32
    a = ar[:cout, :]                                          # conv(x, W)
    r = ar[cout:, :]                                          # conv(x, RANDOM_PROJ)

    bias = b_ref[...]                                         # (Cout, 1) f32

    # Meta branch: relu(conv(x) + b).  (Normalization spec in the original module
    # was an `...` placeholder, so no normalization op is applied.)
    meta = jnp.maximum(a + bias, 0.0)                         # (Cout, Mp)

    # In-kernel wo == 0 mask (valid columns only).  Robust mod-by-Wo via f32
    # multiply + truncate (integer vector mod is avoided on purpose); the +0.5
    # offset keeps truncation exact for all column indices << 2^23.
    mp = ar.shape[1]
    colf = lax.broadcasted_iota(jnp.int32, (1, mp), 1).astype(jnp.float32)
    kq = ((colf + 0.5) * (1.0 / wo_width)).astype(jnp.int32).astype(jnp.float32)
    wo = colf - kq * wo_width                                 # exact integer-valued
    firstf = jnp.where((wo < 0.5) & (colf < (m_valid - 0.5)), 1.0, 0.0)

    # scale = mean(meta[..., :1]), add = mean(meta[..., 1:]).
    # Padded columns have a == 0 exactly (zero patches), so each contributes
    # exactly relu(b_c) to the unmasked total — subtract it in closed form.
    s_first = jnp.sum(meta * firstf)
    s_total = jnp.sum(meta)
    s_pad = n_pad * jnp.sum(jnp.maximum(bias, 0.0))
    s_rest = s_total - s_pad - s_first

    scale = s_first * inv_n_first
    add = s_rest * inv_n_rest

    # conv(x, scale*W + add*RANDOM_PROJ) + b  ==  scale*A + add*R + b
    o_ref[...] = scale * a + add * r + bias


def conv_with_meta_layer_forward(x, conv_w, conv_b, random_proj):
    """x: (N, Cin, H, W); conv_w/random_proj: (Cout, Cin, KH, KW); conv_b: (Cout,)."""
    N, Cin, H, W = x.shape
    Cout, _, KH, KW = conv_w.shape
    Ho, Wo = H - KH + 1, W - KW + 1
    M, K = N * Ho * Wo, Cin * KH * KW
    Mp = ((M + 127) // 128) * 128          # lane-dense (multiple-of-128) width

    # im2col, transposed so the big M = N*Ho*Wo dim lands on lanes.
    # patches_t[ci*KH*KW + i*KW + j, n*Ho*Wo + ho*Wo + wo] == x[n, ci, ho+i, wo+j]
    cols = [x[:, :, i:i + Ho, j:j + Wo] for i in range(KH) for j in range(KW)]
    p = jnp.stack(cols, axis=2)                                 # (N, Cin, KH*KW, Ho, Wo)
    patches_t = p.transpose(1, 2, 0, 3, 4).reshape(K, M)        # (K, M)
    patches_t = jnp.pad(patches_t, ((0, 0), (0, Mp - M))).astype(jnp.bfloat16)

    # Stack conv weight and RANDOM_PROJ -> one (2*Cout, K) MXU operand.
    w_cat = jnp.concatenate([conv_w.reshape(Cout, K),
                             random_proj.reshape(Cout, K)], axis=0).astype(jnp.bfloat16)
    bias_col = conv_b.reshape(Cout, 1).astype(jnp.float32)

    # TODO(synk): the original torch `torch.mul(conv.weight, weight_scale)` and
    # `meta_out.prod(RANDOM_PROJ)` are ill-formed; as in the accepted baseline, both
    # meta terms are reduced to scalar means so the weight modulation is well-defined.
    n_first = N * Ho * Cout                  # elements of meta_out[..., :1]
    n_rest = N * Ho * (Wo - 1) * Cout        # elements of meta_out[..., 1:]

    flops = 2 * (2 * Cout) * K * Mp + 8 * Cout * Mp
    bytes_accessed = 2 * (K * Mp + 2 * Cout * K) + 4 * (Cout + Cout * Mp)

    out_t = pl.pallas_call(
        functools.partial(_fused_meta_conv_kernel,
                          cout=Cout,
                          wo_width=float(Wo),
                          m_valid=float(M),
                          n_pad=float(Mp - M),
                          inv_n_first=1.0 / float(n_first),
                          inv_n_rest=1.0 / float(n_rest)),
        out_shape=jax.ShapeDtypeStruct((Cout, Mp), jnp.float32),
        in_specs=[
            pl.BlockSpec(memory_space=pltpu.MemorySpace.VMEM),   # bias (Cout, 1) f32
            pl.BlockSpec(memory_space=pltpu.MemorySpace.VMEM),   # [W; P] (2*Cout, K) bf16
            pl.BlockSpec(memory_space=pltpu.MemorySpace.VMEM),   # patches (K, Mp) bf16
        ],
        out_specs=pl.BlockSpec(memory_space=pltpu.MemorySpace.VMEM),
        compiler_params=pltpu.CompilerParams(
            # Let XLA fuse the im2col producer into the Mosaic call (no HBM
            # round trip of the ~150 KiB patches intermediate).
            allow_input_fusion=[False, False, True]),
        cost_estimate=pl.CostEstimate(flops=flops, transcendentals=0,
                                      bytes_accessed=bytes_accessed),
    )(bias_col, w_cat, patches_t)

    # NCHW result kept for parity with the torch module; the slice drops the lane pad
    # and fuses with the reshape/transpose on a ~4.6 KiB tensor.
    return out_t[:, :M].reshape(Cout, N, Ho, Wo).transpose(1, 0, 2, 3)


def _reference_forward(x, conv_w, conv_b, random_proj):
    """Pure-JAX f32 reference with identical (documented) semantics."""
    dn = lax.conv_dimension_numbers(x.shape, conv_w.shape, ('NCHW', 'OIHW', 'NCHW'))
    conv = lambda w: lax.conv_general_dilated(
        x, w, window_strides=(1, 1), padding='VALID', dimension_numbers=dn,
        precision=lax.Precision.HIGHEST)
    b4 = conv_b[None, :, None, None]
    meta = jnp.maximum(conv(conv_w) + b4, 0.0)
    scale = jnp.mean(meta[..., :1])
    add = jnp.mean(meta[..., 1:])
    new_w = conv_w * scale + random_proj * add
    return conv(new_w) + b4


if __name__ == "__main__":
    key = jax.random.PRNGKey(0)
    k_x, k_w, k_b, k_p = jax.random.split(key, 4)

    # Conv2d(16, 3, (3, 3)) -> input must have 16 channels.
    N, Cin, H, W = 2, 16, 16, 16
    Cout, KH, KW = 3, 3, 3

    x = jax.random.normal(k_x, (N, Cin, H, W), dtype=jnp.float32)

    # Deterministic parameter init (PyTorch-style uniform bounds for conv, randn for RANDOM_PROJ).
    fan_in = Cin * KH * KW
    bound = 1.0 / (fan_in ** 0.5)
    conv_w = jax.random.uniform(k_w, (Cout, Cin, KH, KW), minval=-bound, maxval=bound,
                                dtype=jnp.float32)
    conv_b = jax.random.uniform(k_b, (Cout,), minval=-bound, maxval=bound, dtype=jnp.float32)
    random_proj = jax.random.normal(k_p, (Cout, Cin, KH, KW), dtype=jnp.float32)

    forward = jax.jit(conv_with_meta_layer_forward)
    out = forward(x, conv_w, conv_b, random_proj)
    jax.block_until_ready(out)

    assert out.shape == (N, Cout, H - KH + 1, W - KW + 1), out.shape

    # bf16 MXU operands (per perf review) shift the conv outputs by
    # O(2^-9 * sqrt(K) * |w||x|); validate against the f32 reference with a
    # commensurate tolerance (structural bugs produce O(1)+ errors).
    ref = _reference_forward(x, conv_w, conv_b, random_proj)
    max_err = float(jnp.max(jnp.abs(out - ref)))
    assert jnp.allclose(out, ref, atol=5e-2, rtol=2e-2), f"max abs err {max_err}"

    print("KERNEL_OK")
</pallas_src>

<mosaic_0001>
module attributes {stable_mosaic.version = 11 : i64} {
  func.func @_fused_meta_conv_kernel(%arg0: memref<3x1xf32, #tpu.memory_space<vmem>>, %arg1: memref<6x144xbf16, #tpu.memory_space<vmem>>, %arg2: memref<144x512xbf16, #tpu.memory_space<vmem>>, %arg3: memref<3x512xf32, #tpu.memory_space<vmem>>) attributes {dimension_semantics = [], scalar_prefetch = 0 : i64, scratch_operands = 0 : i64, tpu.core_type = #tpu.core_type<tc>} {
    %c0 = arith.constant 0 : index
    %c0_0 = arith.constant 0 : index
    %0 = vector.load %arg1[%c0, %c0_0] : memref<6x144xbf16, #tpu.memory_space<vmem>>, vector<6x144xbf16>
    %c0_1 = arith.constant 0 : index
    %c0_2 = arith.constant 0 : index
    %1 = vector.load %arg2[%c0_1, %c0_2] : memref<144x512xbf16, #tpu.memory_space<vmem>>, vector<144x512xbf16>
    %cst = arith.constant dense<0.000000e+00> : vector<6x512xf32>
    %2 = tpu.matmul %0, %1, %cst {dimension_numbers = #tpu.dot_dimension_numbers<[1], [0], [0], [1], [0, 0, 1, 1], [], []>} : vector<6x144xbf16>, vector<144x512xbf16>, vector<6x512xf32> -> vector<6x512xf32>
    %3 = vector.extract_strided_slice %2 {offsets = [0, 0], sizes = [3, 512], strides = [1, 1]} : vector<6x512xf32> to vector<3x512xf32>
    %4 = vector.extract_strided_slice %2 {offsets = [3, 0], sizes = [3, 512], strides = [1, 1]} : vector<6x512xf32> to vector<3x512xf32>
    %c0_3 = arith.constant 0 : index
    %c0_4 = arith.constant 0 : index
    %5 = vector.load %arg0[%c0_3, %c0_4] : memref<3x1xf32, #tpu.memory_space<vmem>>, vector<3x1xf32>
    %6 = vector.broadcast %5 : vector<3x1xf32> to vector<3x512xf32>
    %7 = arith.addf %3, %6 : vector<3x512xf32>
    %cst_5 = arith.constant 0.000000e+00 : f32
    %8 = vector.broadcast %cst_5 : f32 to vector<3x512xf32>
    %9 = arith.maximumf %7, %8 : vector<3x512xf32>
    %10 = tpu.iota {dimensions = array<i32: 1>} : vector<1x512xi32>
    %11 = arith.sitofp %10 : vector<1x512xi32> to vector<1x512xf32>
    %cst_6 = arith.constant 5.000000e-01 : f32
    %12 = vector.broadcast %cst_6 : f32 to vector<1x512xf32>
    %13 = arith.addf %11, %12 : vector<1x512xf32>
    %cst_7 = arith.constant 0.0714285746 : f32
    %14 = vector.broadcast %cst_7 : f32 to vector<1x512xf32>
    %15 = arith.mulf %13, %14 : vector<1x512xf32>
    %16 = arith.fptosi %15 : vector<1x512xf32> to vector<1x512xi32>
    %17 = arith.sitofp %16 : vector<1x512xi32> to vector<1x512xf32>
    %cst_8 = arith.constant 1.400000e+01 : f32
    %18 = vector.broadcast %cst_8 : f32 to vector<1x512xf32>
    %19 = arith.mulf %17, %18 : vector<1x512xf32>
    %20 = arith.subf %11, %19 : vector<1x512xf32>
    %cst_9 = arith.constant 5.000000e-01 : f32
    %21 = vector.broadcast %cst_9 : f32 to vector<1x512xf32>
    %22 = arith.cmpf olt, %20, %21 : vector<1x512xf32>
    %cst_10 = arith.constant 3.915000e+02 : f32
    %23 = vector.broadcast %cst_10 : f32 to vector<1x512xf32>
    %24 = arith.cmpf olt, %11, %23 : vector<1x512xf32>
    %25 = arith.andi %22, %24 : vector<1x512xi1>
    %cst_11 = arith.constant 1.000000e+00 : f32
    %cst_12 = arith.constant 0.000000e+00 : f32
    %26 = vector.broadcast %cst_11 : f32 to vector<1x512xf32>
    %27 = vector.broadcast %cst_12 : f32 to vector<1x512xf32>
    %28 = arith.select %25, %26, %27 : vector<1x512xi1>, vector<1x512xf32>
    %29 = vector.broadcast %28 : vector<1x512xf32> to vector<3x512xf32>
    %30 = arith.mulf %9, %29 : vector<3x512xf32>
    %31 = vector.shape_cast %30 : vector<3x512xf32> to vector<1x3x512xf32>
    %cst_13 = arith.constant dense<0.000000e+00> : vector<1xf32>
    %32 = vector.multi_reduction <add>, %31, %cst_13 [1, 2] : vector<1x3x512xf32> to vector<1xf32>
    %33 = vector.shape_cast %32 : vector<1xf32> to vector<1x1x1xf32>
    %34 = vector.extract %33[0, 0, 0] : f32 from vector<1x1x1xf32>
    %35 = vector.shape_cast %9 : vector<3x512xf32> to vector<1x3x512xf32>
    %cst_14 = arith.constant dense<0.000000e+00> : vector<1xf32>
    %36 = vector.multi_reduction <add>, %35, %cst_14 [1, 2] : vector<1x3x512xf32> to vector<1xf32>
    %37 = vector.shape_cast %36 : vector<1xf32> to vector<1x1x1xf32>
    %38 = vector.extract %37[0, 0, 0] : f32 from vector<1x1x1xf32>
    %cst_15 = arith.constant 0.000000e+00 : f32
    %39 = vector.broadcast %cst_15 : f32 to vector<3x1xf32>
    %40 = arith.maximumf %5, %39 : vector<3x1xf32>
    %41 = vector.shape_cast %40 : vector<3x1xf32> to vector<1x3x1xf32>
    %cst_16 = arith.constant dense<0.000000e+00> : vector<1xf32>
    %42 = vector.multi_reduction <add>, %41, %cst_16 [1, 2] : vector<1x3x1xf32> to vector<1xf32>
    %43 = vector.shape_cast %42 : vector<1xf32> to vector<1x1x1xf32>
    %44 = vector.extract %43[0, 0, 0] : f32 from vector<1x1x1xf32>
    %cst_17 = arith.constant 1.200000e+02 : f32
    %45 = arith.mulf %cst_17, %44 : f32
    %46 = arith.subf %38, %45 : f32
    %47 = arith.subf %46, %34 : f32
    %cst_18 = arith.constant 0.0119047621 : f32
    %48 = arith.mulf %34, %cst_18 : f32
    %cst_19 = arith.constant 9.15750919E-4 : f32
    %49 = arith.mulf %47, %cst_19 : f32
    %50 = vector.broadcast %48 : f32 to vector<3x512xf32>
    %51 = arith.mulf %50, %3 : vector<3x512xf32>
    %52 = vector.broadcast %49 : f32 to vector<3x512xf32>
    %53 = arith.mulf %52, %4 : vector<3x512xf32>
    %54 = arith.addf %51, %53 : vector<3x512xf32>
    %55 = vector.broadcast %5 : vector<3x1xf32> to vector<3x512xf32>
    %56 = arith.addf %54, %55 : vector<3x512xf32>
    %c0_20 = arith.constant 0 : index
    %c0_21 = arith.constant 0 : index
    %57 = vector.load %arg3[%c0_20, %c0_21] : memref<3x512xf32, #tpu.memory_space<vmem>>, vector<3x512xf32>
    tpu.vector_store %arg3[%c0_20, %c0_21], %56 {strides = array<i32>} : memref<3x512xf32, #tpu.memory_space<vmem>>, vector<3x512xf32>,
    return
  }
}

</mosaic_0001>

<bundles_post_ra>
// kernel: conv_with_meta_layer_forward.2
= control target key start
LH: loop header
LB: loop body
LE: loop exit
PB: predicated region body
PF: predicated region fallthrough
CT: control target
= control target key end

     0   :  { %s2264_s0 = inlined_call_operand.vmem [shape: f32[3,1], index: 0, kind: input, shape index: {}]   ;;  %s2265_s1 = inlined_call_operand.vmem [shape: bf16[6,144], index: 1, kind: input, shape index: {}]   ;;  %s2266_s2 = inlined_call_operand.vmem [shape: bf16[144,392], index: 2, kind: input, shape index: {}]   ;;  %s2267_s3 = inlined_call_operand.<no memory space> [shape: bf16[], index: 3, kind: input, shape index: {}]   ;;  %s2268_s4 = inlined_call_operand.vmem [shape: f32[3,512], index: 4, kind: output, shape index: {}]  }
   0x1   :  { %v9_v0 = vstv %s2267_s3 }
   0x2   :  { %v1981_v1 = vunpack.i.l.bf16 %v9_v0 }
   0x3   :  { %v1889_v2 = vld [vmem:[%s2266_s2 + $0xe0] sm:$0xff]   ;;  %v73_v3 = vlaneseq  ;;  %v1890_v4 = vld [vmem:[%s2266_s2 + $0xf0] sm:$0xff]   ;;  %v1716_v11 = vld [vmem:[%s2266_s2 + $0xe8] sm:$0xf]  ;;  %v1951_v14 = vmov 0   ;;  %v1952_v26 = vmov 0.0  }
   0x4   :  { %v1893_v5 = vld [vmem:[%s2266_s2 + $0xc0] sm:$0xff]   ;;  %v1761_v7 = vcombine.high %v1889_v2, %v1890_v4  ;;  %v1760_v8 = vcombine.low %v1889_v2, %v1890_v4  ;;  %v1894_v9 = vld [vmem:[%s2266_s2 + $0xd0] sm:$0xff]   ;;  %v1717_v12 = vld [vmem:[%s2266_s2 + $0xec] ss:$16 sps:$4 sm:$0xff]   ;;  %1888 = vset.pattern.permute.xlu0 %v1951_v14  ;;  %969 = vst [vmem:[#allocation7 + $0xe8] sm:$0xf] %v1716_v11 }
   0x5   :  { %v1992_v6 = vand.u32 127, %v73_v3  ;;  %v1899_v13 = vld [vmem:[%s2266_s2 + $0xa0] sm:$0xff]   ;;  %v1757_v15 = vcombine.high %v1893_v5, %v1894_v9  ;;  %v981_v16 = vunpack.c.l.bf16 %v1717_v12  ;;  %v1720_v17 = vld [vmem:[%s2266_s2 + $0xf8] sm:$0xf]  ;;  %v1046_v18 = vunpack.c.h.bf16 %v1717_v12  ;;  %v1900_v20 = vld [vmem:[%s2266_s2 + $0xb0] sm:$0xff]  }
   0x6   :  { %1416 = vmatprep.subr.bf16.mxu0 %v1761_v7  ;;  %v1756_v19 = vcombine.low %v1893_v5, %v1894_v9  ;;  %1034 = vst [vmem:[#allocation7 + $0xf8] sm:$0xf] %v1720_v17  ;;  %v1708_v23 = vld [vmem:[%s2266_s2 + $0xc8] sm:$0xf]  ;;  %v1709_v24 = vld [vmem:[%s2266_s2 + $0xcc] ss:$16 sps:$4 sm:$0xff]   ;;  %v1753_v29 = vcombine.high %v1899_v13, %v1900_v20  ;;  %v1752_v34 = vcombine.low %v1899_v13, %v1900_v20 }
   0x7   :  { %v1998_v10 = vadd.s32 384, %v1992_v6  ;;  %1417 = vmatpush1.bf16.msra.mxu0 %v1760_v8  ;;  %v1712_v25 = vld [vmem:[%s2266_s2 + $0xd8] sm:$0xf]  ;;  %839 = vst [vmem:[#allocation7 + $0xc8] sm:$0xf] %v1708_v23  ;;  %v1906_v30 = vld [vmem:[%s2266_s2 + $0x80] sm:$0xff]   ;;  %v851_v31 = vunpack.c.l.bf16 %v1709_v24  ;;  %v916_v32 = vunpack.c.h.bf16 %v1709_v24 }
   0x8   :  { %1418 = vmatprep.subr.bf16.mxu0 %v1757_v15  ;;  %904 = vst [vmem:[#allocation7 + $0xd8] sm:$0xf] %v1712_v25  ;;  %v1907_v33 = vld [vmem:[%s2266_s2 + $0x90] sm:$0xff]   ;;  %v1700_v35 = vld [vmem:[%s2266_s2 + $0xa8] sm:$0xf]  ;;  %v1913_v41 = vld [vmem:[%s2266_s2 + $0x60] sm:$0xff]  }
   0x9   :  { %vm76_vm0 = vcmp.lt.s32.totalorder %v1998_v10, 392  ;;  %v1701_v36 = vld [vmem:[%s2266_s2 + $0xac] ss:$16 sps:$4 sm:$0xff]   ;;  %v1704_v37 = vld [vmem:[%s2266_s2 + $0xb8] sm:$0xf]  ;;  %v1749_v40 = vcombine.high %v1906_v30, %v1907_v33  ;;  %v1914_v46 = vld [vmem:[%s2266_s2 + $0x70] sm:$0xff]   ;;  %v1748_v50 = vcombine.low %v1906_v30, %v1907_v33 }
   0xa   :  { %v987_v21 = vsel %vm76_vm0, %v981_v16, %v1981_v1  ;;  %v1052_v22 = vsel %vm76_vm0, %v1046_v18, %v1981_v1  ;;  %v857_v38 = vsel %vm76_vm0, %v851_v31, %v1981_v1  ;;  %v922_v39 = vsel %vm76_vm0, %v916_v32, %v1981_v1  ;;  %709 = vst [vmem:[#allocation7 + $0xa8] sm:$0xf] %v1700_v35  ;;  %v1692_v47 = vld [vmem:[%s2266_s2 + $0x88] sm:$0xf]  ;;  %v1693_v48 = vld [vmem:[%s2266_s2 + $0x8c] ss:$16 sps:$4 sm:$0xff]  }
   0xb   :  { %v989_v27 = vpack.c.bf16 %v1952_v26, %v987_v21  ;;  %v1054_v28 = vpack.c.bf16 %v1952_v26, %v1052_v22  ;;  %1419 = vmatpush1.bf16.msra.mxu0 %v1756_v19  ;;  %774 = vst [vmem:[#allocation7 + $0xb8] sm:$0xf] %v1704_v37  ;;  %v859_v42 = vpack.c.bf16 %v1952_v26, %v857_v38  ;;  %v721_v44 = vunpack.c.l.bf16 %v1701_v36  ;;  %v1696_v49 = vld [vmem:[%s2266_s2 + $0x98] sm:$0xf]  ;;  %v2080_v54 = vld [vmem:[%s2266_s2 + $0x40] sm:$0xff]   ;;  %v1921_v59 = vld [vmem:[%s2266_s2 + $0x50] sm:$0xff]  }
   0xc   :  { %1420 = vmatprep.subr.bf16.mxu0 %v1753_v29  ;;  %v924_v43 = vpack.c.bf16 %v1952_v26, %v922_v39  ;;  %v786_v45 = vunpack.c.h.bf16 %v1701_v36  ;;  %v1745_v53 = vcombine.high %v1913_v41, %v1914_v46  ;;  %579 = vst [vmem:[#allocation7 + $0x88] sm:$0xf] %v1692_v47  ;;  %644 = vst [vmem:[#allocation7 + $0x98] sm:$0xf] %v1696_v49  ;;  %v591_v57 = vunpack.c.l.bf16 %v1693_v48  ;;  %v1684_v60 = vld [vmem:[%s2266_s2 + $0x68] sm:$0xf] }
   0xd   :  { %992 = vst [vmem:[#allocation7 + $0xec] sm:$0xf] %v989_v27  ;;  %1057 = vst [vmem:[#allocation7 + $0xfc] sm:$0xf] %v1054_v28  ;;  %v727_v51 = vsel %vm76_vm0, %v721_v44, %v1981_v1  ;;  %v656_v58 = vunpack.c.h.bf16 %v1693_v48  ;;  %v1685_v61 = vld [vmem:[%s2266_s2 + $0x6c] ss:$16 sps:$4 sm:$0xff]   ;;  %v1744_v0 = vcombine.low %v1913_v41, %v1914_v46  ;;  %v1741_v11 = vcombine.high %v2080_v54, %v1921_v59 }
   0xe   :  { %862 = vst [vmem:[#allocation7 + $0xcc] sm:$0xf] %v859_v42  ;;  %927 = vst [vmem:[#allocation7 + $0xdc] sm:$0xf] %v924_v43  ;;  %v792_v52 = vsel %vm76_vm0, %v786_v45, %v1981_v1  ;;  %v729_v55 = vpack.c.bf16 %v1952_v26, %v727_v51  ;;  %v1688_v62 = vld [vmem:[%s2266_s2 + $0x78] sm:$0xf]  ;;  %v597_v2 = vsel %vm76_vm0, %v591_v57, %v1981_v1  ;;  %v461_v8 = vunpack.c.l.bf16 %v1685_v61 }
   0xf   :  { %1421 = vmatpush1.bf16.msra.mxu0 %v1752_v34  ;;  %v794_v56 = vpack.c.bf16 %v1952_v26, %v792_v52  ;;  %v662_v3 = vsel %vm76_vm0, %v656_v58, %v1981_v1  ;;  %449 = vst [vmem:[#allocation7 + $0x68] sm:$0xf] %v1684_v60  ;;  %514 = vst [vmem:[#allocation7 + $0x78] sm:$0xf] %v1688_v62  ;;  %v1902_v4 = vld [vmem:[#allocation7 + $0xe8] ss:$16 sps:$4 sm:$0xff]   ;;  %v599_v5 = vpack.c.bf16 %v1952_v26, %v597_v2 }
  0x10   :  { %1422 = vmatprep.subr.bf16.mxu0 %v1749_v40  ;;  %732 = vst [vmem:[#allocation7 + $0xac] sm:$0xf] %v729_v55  ;;  %v664_v7 = vpack.c.bf16 %v1952_v26, %v662_v3  ;;  %v526_v9 = vunpack.c.h.bf16 %v1685_v61  ;;  %v1927_v12 = vld [vmem:[%s2266_s2 + $0x20] sm:$0xff]   ;;  %v467_v13 = vsel %vm76_vm0, %v461_v8, %v1981_v1  ;;  %v1928_v15 = vld [vmem:[%s2266_s2 + $0x30] sm:$0xff]   ;;  %v1676_v16 = vld [vmem:[%s2266_s2 + $0x48] sm:$0xf]  ;;  %v1740_v24 = vcombine.low %v2080_v54, %v1921_v59 }
  0x11   :  { %797 = vst [vmem:[#allocation7 + $0xbc] sm:$0xf] %v794_v56  ;;  %602 = vst [vmem:[#allocation7 + $0x8c] sm:$0xf] %v599_v5  ;;  %v1677_v17 = vld [vmem:[%s2266_s2 + $0x4c] ss:$16 sps:$4 sm:$0xff]   ;;  %v469_v19 = vpack.c.bf16 %v1952_v26, %v467_v13  ;;  %v1737_v28 = vcombine.high %v1927_v12, %v1928_v15  ;;  %v1736_v38 = vcombine.low %v1927_v12, %v1928_v15 }
  0x12   :  { %667 = vst [vmem:[#allocation7 + $0x9c] sm:$0xf] %v664_v7  ;;  %v532_v14 = vsel %vm76_vm0, %v526_v9, %v1981_v1  ;;  %319 = vst [vmem:[#allocation7 + $0x48] sm:$0xf] %v1676_v16  ;;  %v331_v21 = vunpack.c.l.bf16 %v1677_v17  ;;  %v396_v22 = vunpack.c.h.bf16 %v1677_v17  ;;  %v1909_v23 = vld [vmem:[#allocation7 + $0xc8] ss:$16 sps:$4 sm:$0xff]  }
  0x13   :  { %1423 = vmatpush1.bf16.msra.mxu0 %v1748_v50  ;;  %v534_v20 = vpack.c.bf16 %v1952_v26, %v532_v14  ;;  %v1680_v25 = vld [vmem:[%s2266_s2 + $0x58] sm:$0xf]  ;;  %v20_v27 = vld [vmem:[%s2266_s2] sm:$0xff]   ;;  %472 = vst [vmem:[#allocation7 + $0x6c] sm:$0xf] %v469_v19  ;;  %v1934_v31 = vld [vmem:[%s2266_s2 + $0x10] sm:$0xff]  }
  0x14   :  { %v1897_v63 = vld [vmem:[#allocation7 + $0xec] ss:$16 sps:$4 sm:$0xff]   ;;  %1424 = vmatprep.subr.bf16.mxu0 %v1745_v53  ;;  %v337_v29 = vsel %vm76_vm0, %v331_v21, %v1981_v1  ;;  %384 = vst [vmem:[#allocation7 + $0x58] sm:$0xf] %v1680_v25  ;;  %v402_v30 = vsel %vm76_vm0, %v396_v22, %v1981_v1  ;;  %31 = vst [vmem:[#allocation7] sm:$0xff] %v20_v27   ;;  %v1938_v46 = vld [vmem:[%s2266_s2 + $0x100] sm:$0xff]   ;;  %v1517_v27 = vcvt.s32.f32 %v1992_v6 }
  0x15   :  { %1457 = vmatprep.subr.bf16.mxu1 %v1897_v63  ;;  %v1904_v18 = vld [vmem:[#allocation7 + $0xcc] ss:$16 sps:$4 sm:$0xff]   ;;  %537 = vst [vmem:[#allocation7 + $0x7c] sm:$0xf] %v534_v20  ;;  %v339_v33 = vpack.c.bf16 %v1952_v26, %v337_v29  ;;  %v404_v34 = vpack.c.bf16 %v1952_v26, %v402_v30  ;;  %v1916_v35 = vld [vmem:[#allocation7 + $0xa8] ss:$16 sps:$4 sm:$0xff]  }
  0x16   :  { %1458 = vmatpush1.bf16.msra.mxu1 %v1902_v4  ;;  %v1668_v36 = vld [vmem:[%s2266_s2 + $0x28] sm:$0xf]  ;;  %v1669_v37 = vld [vmem:[%s2266_s2 + $0x2c] ss:$16 sps:$4 sm:$0xff]   ;;  %v1672_v40 = vld [vmem:[%s2266_s2 + $0x38] sm:$0xf] }
  0x17   :  { %1425 = vmatpush1.bf16.msra.mxu0 %v1744_v0  ;;  %1459 = vmatprep.subr.bf16.mxu1 %v1904_v18  ;;  %342 = vst [vmem:[#allocation7 + $0x4c] sm:$0xf] %v339_v33  ;;  %407 = vst [vmem:[#allocation7 + $0x5c] sm:$0xf] %v404_v34  ;;  %v201_v39 = vunpack.c.l.bf16 %v1669_v37  ;;  %v266_v41 = vunpack.c.h.bf16 %v1669_v37  ;;  %v1923_v43 = vld [vmem:[#allocation7 + $0x88] ss:$16 sps:$4 sm:$0xff]   ;;  %v1520_v34 = vcvt.s32.f32 %v1998_v10 }
  0x18   :  { %1426 = vmatprep.subr.bf16.mxu0 %v1741_v11  ;;  %v1911_v32 = vld [vmem:[#allocation7 + $0xac] ss:$16 sps:$4 sm:$0xff]   ;;  %189 = vst [vmem:[#allocation7 + $0x28] sm:$0xf] %v1668_v36  ;;  %254 = vst [vmem:[#allocation7 + $0x38] sm:$0xf] %v1672_v40 }
  0x19   :  { %v1918_v42 = vld [vmem:[#allocation7 + $0x8c] ss:$16 sps:$4 sm:$0xff]   ;;  %v207_v44 = vsel %vm76_vm0, %v201_v39, %v1981_v1  ;;  %v272_v45 = vsel %vm76_vm0, %v266_v41, %v1981_v1  ;;  %v1939_v49 = vld [vmem:[%s2266_s2 + $0x110] sm:$0xff]   ;;  %v1189_v50 = vld [vmem:[%s2265_s1] sm:$0x77]  ;;  %vm1412_vm1 = vcmask 130048  }
  0x1a   :  { %1460 = vmatpush1.bf16.msra.mxu1 %v1909_v23  ;;  %v209_v47 = vpack.c.bf16 %v1952_v26, %v207_v44  ;;  %v274_v48 = vpack.c.bf16 %v1952_v26, %v272_v45  ;;  %v1731_v52 = vcombine.high %v1189_v50, %v1189_v50  ;;  %v1930_v53 = vld [vmem:[#allocation7 + $0x68] ss:$16 sps:$4 sm:$0xff]   ;;  %v1765_v58 = vcombine.high %v1938_v46, %v1939_v49  ;;  %v1661_v59 = vld [vmem:[%s2266_s2 + $0xc] ss:$16 sps:$4 sm:$0xff]   ;;  %v2198_v11 = vld [vmem:[%s2264_s0] sm:$0x7] }
  0x1b   :  { %1461 = vmatprep.subr.bf16.mxu1 %v1911_v32  ;;  %1427 = vmatpush1.bf16.msra.mxu0 %v1740_v24  ;;  %v1190_v54 = vld [vmem:[#allocation7] sm:$0xff]  ;;  %v1660_v55 = vld [vmem:[%s2266_s2 + $0x8] sm:$0xf]  ;;  %v1664_v60 = vld [vmem:[%s2266_s2 + $0x18] sm:$0xf]  ;;  %v71_v63 = vunpack.c.l.bf16 %v1661_v59  ;;  %v136_v0 = vunpack.c.h.bf16 %v1661_v59  ;;  %v1764_v2 = vcombine.low %v1938_v46, %v1939_v49  ;;  %v1730_v18 = vcombine.low %v1189_v50, %v1189_v50 }
  0x1c   :  { %1428 = vmatprep.subr.bf16.mxu0 %v1737_v28  ;;  %v1925_v51 = vld [vmem:[#allocation7 + $0x6c] ss:$16 sps:$4 sm:$0xff]   ;;  %212 = vst [vmem:[#allocation7 + $0x2c] sm:$0xf] %v209_v47  ;;  %277 = vst [vmem:[#allocation7 + $0x3c] sm:$0xf] %v274_v48  ;;  %v1733_v56 = vcombine.high %v1190_v54, %v1934_v31  ;;  %v1732_v57 = vcombine.low %v1190_v54, %v1934_v31  ;;  %1768 = vmatprep.mubr.msk.bf16.mxu0 %vm1412_vm1, %v1731_v52 }
  0x1d   :  { %59 = vst [vmem:[#allocation7 + $0x8] sm:$0xf] %v1660_v55  ;;  %v1724_v61 = vld [vmem:[%s2266_s2 + $0x108] sm:$0xf]  ;;  %124 = vst [vmem:[#allocation7 + $0x18] sm:$0xf] %v1664_v60  ;;  %1769 = vmatprep.mubr.msk.bf16.mxu1 %vm1412_vm1, %v1731_v52  ;;  %v77_v5 = vsel %vm76_vm0, %v71_v63, %v1981_v1  ;;  %v142_v7 = vsel %vm76_vm0, %v136_v0, %v1981_v1  ;;  %1501 = vperm.xlu0 %1888, %v2198_v11  }
  0x1e   :  { %1462 = vmatpush1.bf16.msra.mxu1 %v1916_v35  ;;  %v1932_v62 = vld [vmem:[#allocation7 + $0x4c] ss:$16 sps:$4 sm:$0xff]   ;;  %1099 = vst [vmem:[#allocation7 + $0x108] sm:$0xf] %v1724_v61  ;;  %v1728_v4 = vld [vmem:[%s2266_s2 + $0x118] sm:$0xf]  ;;  %v79_v13 = vpack.c.bf16 %v1952_v26, %v77_v5  ;;  %v144_v14 = vpack.c.bf16 %v1952_v26, %v142_v7 }
  0x1f   :  { %1463 = vmatprep.subr.bf16.mxu1 %v1918_v42  ;;  %1429 = vmatpush1.bf16.msra.mxu0 %v1736_v38  ;;  %v1725_v3 = vld [vmem:[%s2266_s2 + $0x10c] ss:$16 sps:$4 sm:$0xff]   ;;  %1164 = vst [vmem:[#allocation7 + $0x118] sm:$0xf] %v1728_v4  ;;  %v1935_v12 = vld [vmem:[#allocation7 + $0x48] ss:$16 sps:$4 sm:$0xff]  }
  0x20   :  { %1430 = vmatprep.subr.bf16.mxu0 %v1733_v56  ;;  %v1111_v8 = vunpack.c.l.bf16 %v1725_v3  ;;  %v1176_v9 = vunpack.c.h.bf16 %v1725_v3  ;;  %82 = vst [vmem:[#allocation7 + $0xc] sm:$0xf] %v79_v13  ;;  %147 = vst [vmem:[#allocation7 + $0x1c] sm:$0xf] %v144_v14  ;;  %v1941_v21 = vld [vmem:[#allocation7 + $0x28] ss:$16 sps:$4 sm:$0xff]  }
  0x21   :  { %v1514_v25 = vadd.s32 128, %v1992_v6  ;;  %v1515_v29 = vadd.s32 256, %v1992_v6  ;;  %v1521_v30 = vadd.f32 0.5, %v1517_v27  ;;  %v1524_v38 = vadd.f32 0.5, %v1520_v34 }
  0x22   :  { %1464 = vmatpush1.bf16.msra.mxu1 %v1923_v43  ;;  %v1117_v15 = vsel %vm76_vm0, %v1111_v8, %v1981_v1  ;;  %v1182_v16 = vsel %vm76_vm0, %v1176_v9, %v1981_v1  ;;  %vm1549_vm3 = vcmp.lt.f32.partialorder %v1517_v27, 391.5  ;;  %vm1565_vm10 = vcmask 1042432  }
  0x23   :  { %1465 = vmatprep.subr.bf16.mxu1 %v1925_v51  ;;  %1431 = vmatpush1.bf16.msra.mxu0 %v1732_v57  ;;  %v1936_v17 = vld [vmem:[#allocation7 + $0x2c] ss:$16 sps:$4 sm:$0xff]   ;;  %v1119_v19 = vpack.c.bf16 %v1952_v26, %v1117_v15  ;;  %v1184_v20 = vpack.c.bf16 %v1952_v26, %v1182_v16  ;;  %v1518_v28 = vcvt.s32.f32 %v1514_v25  ;;  %v1519_v32 = vcvt.s32.f32 %v1515_v29 }
  0x24   :  { %1446 = vmatprep.subr.bf16.mxu0 %v1765_v58  ;;  %v1947_v1 = vld [vmem:[#allocation7 + $0x8] ss:$16 sps:$4 sm:$0xff]   ;;  %v1525_v33 = vmul.f32 0.071428575, %v1521_v30  ;;  %v1528_v42 = vmul.f32 0.071428575, %v1524_v38 }
  0x25   :  { %1122 = vst [vmem:[#allocation7 + $0x10c] sm:$0xf] %v1119_v19  ;;  %1187 = vst [vmem:[#allocation7 + $0x11c] sm:$0xf] %v1184_v20  ;;  %v1522_v31 = vadd.f32 0.5, %v1518_v28  ;;  %v1523_v36 = vadd.f32 0.5, %v1519_v32 }
  0x26   :  { %1466 = vmatpush1.bf16.msra.mxu1 %v1930_v53  ;;  %v1950_v24 = vld [vmem:[#allocation7 + $0x108] ss:$16 sps:$4 sm:$0xff]   ;;  %v1872_v37 = vtrunc.f32 %v1525_v33  ;;  %v1878_v46 = vtrunc.f32 %v1528_v42  ;;  %vm1550_vm5 = vcmp.lt.f32.partialorder %v1518_v28, 391.5  ;;  %vm1551_vm9 = vcmp.lt.f32.partialorder %v1519_v32, 391.5 }
  0x27   :  { %1467 = vmatprep.subr.bf16.mxu1 %v1932_v62  ;;  %1447 = vmatpush2.bf16.msra.mxu0 %v1764_v2  ;;  %v1945_v22 = vld [vmem:[#allocation7 + $0xc] ss:$16 sps:$4 sm:$0xff]   ;;  %v1526_v35 = vmul.f32 0.071428575, %v1522_v31  ;;  %v1527_v40 = vmul.f32 0.071428575, %v1523_v36 }
  0x28   :  { %v1873_v41 = vcvt.f32.s32 %v1872_v37  ;;  %v1879_v49 = vcvt.f32.s32 %v1878_v46  ;;  %vm1552_vm12 = vcmp.lt.f32.partialorder %v1520_v34, 391.5  ;;  %v1598_v30 = vmax.f32 %v2198_v11, 0.0 }
  0x29   :  { %v1874_v39 = vtrunc.f32 %v1526_v35  ;;  %v1876_v44 = vtrunc.f32 %v1527_v40  ;;  %vm1599_vm15 = vcmask 2048  }
  0x2a   :  { %1468 = vmatpush1.bf16.msra.mxu1 %v1935_v12  ;;  %1449 = vmatmul.mubr.bf16.vlgmr.msra.gmra.mxu0 %v1730_v18  ;;  %v1533_v45 = vcvt.s32.f32 %v1873_v41  ;;  %v1536_v10 = vcvt.s32.f32 %v1879_v49  ;;  %v1600_v37 = vsel %vm1599_vm15, %v1598_v30, 0.0 }
  0x2b   :  { %1469 = vmatprep.subr.bf16.mxu1 %v1936_v17  ;;  %v1875_v43 = vcvt.f32.s32 %v1874_v39  ;;  %v1877_v6 = vcvt.f32.s32 %v1876_v44 }
  0x2c   :  { %v1948_v23 = vld [vmem:[#allocation7 + $0x10c] ss:$16 sps:$4 sm:$0xff]   ;;  %v1537_v48 = vmul.f32 14.0, %v1533_v45  ;;  %v1540_v58 = vmul.f32 14.0, %v1536_v10 }
  0x2d   :  { %v1534_v47 = vcvt.s32.f32 %v1875_v43  ;;  %v1535_v51 = vcvt.s32.f32 %v1877_v6 }
  0x2e   :  { %1470 = vmatpush1.bf16.msra.mxu1 %v1941_v21  ;;  %v1541_v52 = vsub.f32 %v1517_v27, %v1537_v48  ;;  %v1544_v0 = vsub.f32 %v1520_v34, %v1540_v58 }
  0x2f   :  { %1471 = vmatprep.subr.bf16.mxu1 %v1945_v22  ;;  %v1538_v50 = vmul.f32 14.0, %v1534_v47  ;;  %v1539_v56 = vmul.f32 14.0, %v1535_v51 }
  0x30   :  { %vm1545_vm2 = vcmp.lt.f32.partialorder %v1541_v52, 0.5  ;;  %vm1548_vm11 = vcmp.lt.f32.partialorder %v1544_v0, 0.5 }
  0x31   :  { %v1542_v53 = vsub.f32 %v1518_v28, %v1538_v50  ;;  %v1543_v62 = vsub.f32 %v1519_v32, %v1539_v56  ;;  %vm1553_vm6 = vmand %vm1545_vm2, %vm1549_vm3 }
  0x32   :  { %1472 = vmatpush1.bf16.msra.mxu1 %v1947_v1  ;;  %v1557_v4 = vsel %vm1553_vm6, 1.0, %v1952_v26  ;;  %vm1556_vm14 = vmand %vm1548_vm11, %vm1552_vm12 }
  0x33   :  { %1487 = vmatprep.subr.bf16.mxu1 %v1948_v23  ;;  %vm1546_vm4 = vcmp.lt.f32.partialorder %v1542_v53, 0.5  ;;  %vm1547_vm8 = vcmp.lt.f32.partialorder %v1543_v62, 0.5  ;;  %v1560_v1 = vsel %vm1556_vm14, 1.0, %v1952_v26 }
  0x34   :  { %vm1554_vm7 = vmand %vm1546_vm4, %vm1550_vm5 }
  0x35   :  { %v1558_v5 = vsel %vm1554_vm7, 1.0, %v1952_v26  ;;  %vm1555_vm13 = vmand %vm1547_vm8, %vm1551_vm9 }
  0x36   :  { %1488 = vmatpush2.bf16.msra.mxu1 %v1950_v24  ;;  %v1559_v15 = vsel %vm1555_vm13, 1.0, %v1952_v26 }
  0x39   :  { %1490 = vmatmul.mubr.bf16.vlgmr.msra.gmra.mxu1 %v1730_v18 }
  0x98   :  { %v2217_v55 = vpop.permute.xlu0 %1501 }
  0xea   :  { %v2215_v54 = vpop.f32.mrf.mxu0 }
  0xeb   :  { %v1504_v60 = vadd.f32 %v2217_v55, %v2215_v54 }
  0xec   :  { %v2219_v57 = vpop.f32.mrf.mxu0 }
  0xed   :  { %v1505_v61 = vadd.f32 %v2217_v55, %v2219_v57  ;;  %v1508_v2 = vmax.f32 %v1504_v60, 0.0 }
  0xee   :  { %v1454_v59 = vpop.f32.mrf.mxu0 }
  0xef   :  { %v1509_v3 = vmax.f32 %v1505_v61, 0.0  ;;  %v1561_v7 = vmul.f32 %v1557_v4, %v1508_v2  ;;  %v1582_v13 = vsel %vm1565_vm10, %v1508_v2, 0.0 }
  0xf0   :  { %v1455_v63 = vpop.f32.mrf.mxu0 }
  0xf1   :  { %v1562_v8 = vmul.f32 %v1558_v5, %v1509_v3  ;;  %v1583_v14 = vsel %vm1565_vm10, %v1509_v3, 0.0  ;;  %v1566_v19 = vsel %vm1565_vm10, %v1561_v7, 0.0 }
  0xf2   :  { %v1584_v22 = vadd.f32 %v1583_v14, %v1582_v13 }
  0xf3   :  { %v1567_v20 = vsel %vm1565_vm10, %v1562_v8, 0.0 }
  0xf4   :  { %v1568_v29 = vadd.f32 %v1567_v20, %v1566_v19 }
  0xf9   :  { %v2227_v9 = vpop.f32.mrf.mxu1 }
  0xfa   :  { %v1506_v12 = vadd.f32 %v2217_v55, %v2227_v9 }
  0xfb   :  { %v2234_v16 = vpop.f32.mrf.mxu1 }
  0xfc   :  { %v1510_v17 = vmax.f32 %v1506_v12, 0.0  ;;  %v1507_v18 = vadd.f32 %v2217_v55, %v2234_v16 }
  0xfd   :  { %v1495_v21 = vpop.f32.mrf.mxu1 }
  0xfe   :  { %v1563_v23 = vmul.f32 %v1559_v15, %v1510_v17  ;;  %v1511_v24 = vmax.f32 %v1507_v18, 0.0  ;;  %v1585_v25 = vsel %vm1565_vm10, %v1510_v17, 0.0 }
  0xff   :  { %v1496_v27 = vpop.f32.mrf.mxu1  ;;  %v1586_v28 = vadd.f32 %v1585_v25, %v1584_v22 }
 0x100   :  { %v1587_v31 = vsel %vm1565_vm10, %v1511_v24, 0.0  ;;  %v1564_v32 = vmul.f32 %v1560_v1, %v1511_v24  ;;  %v1569_v33 = vsel %vm1565_vm10, %v1563_v23, 0.0 }
 0x101   :  { %v1588_v34 = vadd.f32 %v1587_v31, %v1586_v28  ;;  %v1570_v35 = vadd.f32 %v1569_v33, %v1568_v29 }
 0x102   :  { %v1571_v36 = vsel %vm1565_vm10, %v1564_v32, 0.0 }
 0x103   :  { %1589 = vadd.xlane.f32.xlu1 %v1588_v34  ;;  %v1572_v26 = vadd.f32 %v1571_v36, %v1570_v35 }
 0x105   :  { %1573 = vadd.xlane.f32.xlu0 %v1572_v26 }
 0x107   :  { %1601 = vadd.xlane.f32.xlu1 %v1600_v37 }
 0x18c   :  { %v1590_v38 = vpop.xlane.xlu1 %1589 }
 0x18d   :  { %v1591_v39 = vrot.slane %v1590_v38, 4 }
 0x18e   :  { %v1574_v40 = vpop.xlane.xlu0 %1573 }
 0x18f   :  { %v1592_v41 = vadd.f32 %v1591_v39, %v1590_v38  ;;  %v1575_v11 = vrot.slane %v1574_v40, 4 }
 0x190   :  { %v1602_v42 = vpop.xlane.xlu1 %1601 }
 0x191   :  { %v1593_v43 = vrot.slane %v1592_v41, 2  ;;  %v1576_v44 = vadd.f32 %v1575_v11, %v1574_v40  ;;  %v1603_v45 = vrot.slane %v1602_v42, 4 }
 0x193   :  { %v1577_v46 = vrot.slane %v1576_v44, 2  ;;  %v1604_v47 = vadd.f32 %v1603_v45, %v1602_v42  ;;  %v1594_v6 = vadd.f32 %v1593_v43, %v1592_v41 }
 0x195   :  { %v1605_v48 = vrot.slane %v1604_v47, 2  ;;  %v1578_v49 = vadd.f32 %v1577_v46, %v1576_v44  ;;  %v1595_v50 = vrot.slane %v1594_v6, 1 }
 0x197   :  { %v1606_v51 = vadd.f32 %v1605_v48, %v1604_v47  ;;  %v1579_v52 = vrot.slane %v1578_v49, 1  ;;  %v1596_v56 = vadd.f32 %v1595_v50, %v1594_v6 }
 0x199   :  { %v1580_v10 = vadd.f32 %v1579_v52, %v1578_v49  ;;  %v1607_v53 = vrot.slane %v1606_v51, 1 }
 0x19b   :  { %1880 = vpush %v1580_v10  ;;  %v1608_v58 = vadd.f32 %v1607_v53, %v1606_v51 }
 0x19c   :  { %1882 = vpush %v1596_v56 }
 0x19d   :  { %1884 = vpush %v1608_v58 }
 0x1cc   :  { %s1881_s0 = spop %1880 }
 0x1cd   :  { %s1883_s2 = spop %1882  ;;  %s1613_s5 = smul.f32 0.011904762, %s1881_s0 }
 0x1ce   :  { %s1885_s28 = spop %1884 }
 0x1cf   :  { %s1610_s29 = smul.f32 120.0, %s1885_s28  ;;  %v1615_v59 = vstv %s1613_s5 }
 0x1d0   :  { %v1616_v2 = vmul.f32 %v1615_v59, %v2215_v54  ;;  %v1617_v3 = vmul.f32 %v1615_v59, %v2219_v57  ;;  %v1618_v4 = vmul.f32 %v1615_v59, %v2227_v9  ;;  %v1619_v5 = vmul.f32 %v1615_v59, %v2234_v16 }
 0x1d1   :  { %s1611_s30 = ssub.f32 %s1883_s2, %s1610_s29 }
 0x1d3   :  { %s1612_s6 = ssub.f32 %s1611_s30, %s1881_s0 }
 0x1d5   :  { %s1614_s7 = smul.f32 0.0009157509, %s1612_s6 }
 0x1d7   :  { %v1620_v60 = vstv %s1614_s7 }
 0x1d8   :  { %v1621_v61 = vmul.f32 %v1620_v60, %v2215_v54  ;;  %v1622_v62 = vmul.f32 %v1620_v60, %v2219_v57  ;;  %v1623_v63 = vmul.f32 %v1620_v60, %v2227_v9  ;;  %v1624_v0 = vmul.f32 %v1620_v60, %v2234_v16 }
 0x1da   :  { %v1629_v7 = vrot.slane %v1621_v61, 3  ;;  %v1630_v8 = vrot.slane %v1622_v62, 3  ;;  %v1631_v12 = vrot.slane %v1623_v63, 3  ;;  %v1632_v13 = vrot.slane %v1624_v0, 3 }
 0x1dc   :  { %v1637_v14 = vadd.f32 %v1629_v7, %v1616_v2  ;;  %v1638_v15 = vadd.f32 %v1630_v8, %v1617_v3  ;;  %v1639_v17 = vadd.f32 %v1631_v12, %v1618_v4  ;;  %v1640_v18 = vadd.f32 %v1632_v13, %v1619_v5 }
 0x1de   :  { %v1641_v19 = vadd.f32 %v1637_v14, %v2217_v55  ;;  %v1642_v20 = vadd.f32 %v1638_v15, %v2217_v55  ;;  %v1643_v54 = vadd.f32 %v1639_v17, %v2217_v55  ;;  %v1644_v57 = vadd.f32 %v1640_v18, %v2217_v55 }
 0x1e0   :  { %v1649_v21 = vcombine.low %v1641_v19, %v1642_v20  ;;  %v1650_v9 = vcombine.low %v1643_v54, %v1644_v57 }
 0x1e2   :  { %1653 = vst [vmem:[%s2268_s4] sm:$0x77] %v1649_v21  ;;  %1654 = vst [vmem:[%s2268_s4 + $0x8] sm:$0x77] %v1650_v9 }

</bundles_post_ra>
